<compile_context>
chip_gen: v7x
topology: tpu7x:2x2x1
jax: 0.10.0
libtpu: 0.0.40
codegen_flags: <defaults>
</compile_context>

<pallas_src>
import jax
import jax.numpy as jnp
import numpy as np
from jax import lax
from jax.experimental import pallas as pl
from jax.experimental.pallas import tpu as pltpu


def _gcb_kernel(x_ref, scw_ref, wrep_ref, dvec_ref, expand_ref, b2col_ref,
                o_ref):
    # x_ref block: (bt*C, HW) -- channel rows on sublanes, HW on lanes.
    x = x_ref[...]                 # (btC, HW), input dtype

    w_blk = scw_ref[0]             # (bt, btC) block-diagonal score-conv weights
    sel = scw_ref[1]               # (bt, btC) block-diagonal 0/1 mask
    w1_rep = wrep_ref[0]           # (btC, D)  tile(conv_1 weight, (bt, 1)), f32
    w2_rep = wrep_ref[1]           # (btC, D)  tile(conv_2 weight, (bt, 1)), f32
    b1 = dvec_ref[0]               # (1, D)
    gamma = dvec_ref[1]            # (1, D)
    beta = dvec_ref[2]             # (1, D)
    expand = expand_ref[...]       # (btC, bt) replicate-rows matrix, f32
    b2_col = b2col_ref[...]        # (btC, 1)  conv_2 bias column, f32

    # --- ContextModeling ----------------------------------------------------
    # Score logits for the whole batch tile in ONE MXU op (block-diag weights),
    # lane-dense over HW.  (Score-conv bias omitted: softmax shift invariance.)
    logits = lax.dot_general(w_blk, x, (((1,), (0,)), ((), ())),
                             preferred_element_type=jnp.float32)      # (bt, HW)
    m = jnp.max(logits, axis=-1, keepdims=True)
    e = jnp.exp(logits - m)
    p = e / jnp.sum(e, axis=-1, keepdims=True)   # exact divide (HBM-bound; free)
    pd = p.astype(x.dtype)

    # Context pooling over HW on the MXU: (bt, HW) . (btC, HW)^T -> (bt, btC).
    # Diagonal C-blocks hold each sample's context; cross-sample terms are
    # masked by `sel` inside the conv_1 matmul below.
    ctx_mat = lax.dot_general(pd, x, (((1,), (1,)), ((), ())),
                              preferred_element_type=jnp.float32)     # (bt, btC)

    # --- ContextTransformer: conv_1 -> LayerNorm -> relu -> conv_2 ----------
    t1 = lax.dot_general(ctx_mat * sel, w1_rep, (((1,), (0,)), ((), ())),
                         preferred_element_type=jnp.float32) + b1     # (bt, D)
    mu = jnp.mean(t1, axis=-1, keepdims=True)
    var = jnp.mean(jnp.square(t1 - mu), axis=-1, keepdims=True)
    t1 = (t1 - mu) * lax.rsqrt(var + 1e-5)       # eps matches nn.LayerNorm
    t1 = jnp.maximum(t1 * gamma + beta, 0.0)

    # conv_2 directly in column layout: replicate each sample's hidden vector
    # onto its C channel rows (tiny MXU op), then a row-wise dot over D.
    t1_rows = lax.dot_general(expand, t1, (((1,), (0,)), ((), ())),
                              preferred_element_type=jnp.float32)     # (btC, D)
    t2_col = jnp.sum(t1_rows * w2_rep, axis=-1, keepdims=True) + b2_col

    # --- residual add: one block-wide, lane/sublane-dense store -------------
    o_ref[...] = (x + t2_col.astype(x.dtype)).astype(o_ref.dtype)


def _pick_batch_tile(B, C, hw, itemsize, block_bytes_target):
    """Choose samples-per-grid-step (bt).

    Preference order:
      1. valid slab tiling: (bt*C) divisible by the sublane pack, or a single
         full-extent block (block shape == array shape),
      2. >= 2 grid steps when B >= 2 (keep both v7x TensorCores busy),
      3. largest block within the byte target (kernel is HBM-bound).
    """
    sub = max(1, 32 // itemsize)             # 8 rows for f32, 16 for bf16
    per = C * hw * itemsize
    cap = min(B, 128)                        # keep helper matrices (bt^2*C) tiny
    feasible = [bt for bt in range(1, cap + 1) if (bt * C) % sub == 0]
    if not feasible:
        feasible = [B]                       # single full-extent step
    within = [bt for bt in feasible if bt * per <= block_bytes_target]
    if not within:
        within = [min(feasible)]
    multi = [bt for bt in within if pl.cdiv(B, bt) >= 2]
    return max(multi) if multi else max(within)


def global_context_block(x_nchw, params, *, block_bytes_target=4 << 20):
    B, C, H, W = x_nchw.shape
    HW = H * W
    dtype = x_nchw.dtype
    itemsize = dtype.itemsize
    f32 = jnp.float32

    bt = _pick_batch_tile(B, C, HW, itemsize, block_bytes_target)
    steps = pl.cdiv(B, bt)
    B_pad = steps * bt
    btC = bt * C

    # Free contiguous reshape (B,C,H,W) -> (B*C, HW); pad batch (not force bt=1)
    # when B is not a multiple of the tile.  Padded rows are discarded at the end.
    x = x_nchw.reshape(B, C, HW)
    if B_pad != B:
        x = jnp.pad(x, ((0, B_pad - B), (0, 0), (0, 0)))
    x = x.reshape(B_pad * C, HW)

    # ---- pack the small parameters into 5 arrays (fewer tiny DMAs) ----------
    ws_vec = params["ws"].reshape(C).astype(f32)
    expand = jnp.repeat(jnp.eye(bt, dtype=f32), C, axis=0)      # (btC, bt)
    sel = expand.T                                              # (bt, btC) 0/1
    w_blk = sel * jnp.tile(ws_vec, bt)[None, :]                 # (bt, btC)
    scw = jnp.stack([w_blk, sel]).astype(dtype)                 # (2, bt, btC)

    w1_rep = jnp.tile(params["w1"].astype(f32), (bt, 1))        # (btC, D)
    w2_rep = jnp.tile(params["w2t"].astype(f32), (bt, 1))       # (btC, D)
    wrep = jnp.stack([w1_rep, w2_rep])                          # (2, btC, D)
    dvec = jnp.stack([params["b1"], params["gamma"],
                      params["beta"]]).astype(f32)              # (3, 1, D)
    b2_col = jnp.tile(params["b2"].astype(f32), (bt, 1))        # (btC, 1)

    # ---- VMEM budget: query capacity, leave ~25% headroom (v7x = 64 MiB) ----
    block_bytes = btC * HW * itemsize
    param_bytes = sum(int(np.prod(a.shape)) * a.dtype.itemsize
                      for a in (scw, wrep, dvec, expand, b2_col))
    try:
        vmem_cap = int(pltpu.get_tpu_info().vmem_capacity_bytes)
    except Exception:
        vmem_cap = 64 << 20
    vmem_limit = int(min((vmem_cap * 3) // 4,
                         max(16 << 20,
                             4 * block_bytes + 2 * param_bytes + (2 << 20))))

    def const_spec(shape):
        return pl.BlockSpec(shape, lambda i: (0,) * len(shape))

    out = pl.pallas_call(
        _gcb_kernel,
        out_shape=jax.ShapeDtypeStruct((B_pad * C, HW), dtype),
        grid=(steps,),
        in_specs=[
            pl.BlockSpec((btC, HW), lambda i: (i, 0)),   # x slab (batch tile)
            const_spec(scw.shape),
            const_spec(wrep.shape),
            const_spec(dvec.shape),
            const_spec(expand.shape),
            const_spec(b2_col.shape),
        ],
        out_specs=pl.BlockSpec((btC, HW), lambda i: (i, 0)),
        compiler_params=pltpu.CompilerParams(
            dimension_semantics=("parallel",),
            vmem_limit_bytes=vmem_limit,
        ),
    )(x, scw, wrep, dvec, expand, b2_col)

    out = out.reshape(B_pad, C, H, W)
    return out[:B] if B_pad != B else out


def reference_gcb(x_nchw, p):
    """Pure-JAX reference mirroring the PyTorch module (incl. the score bias)."""
    B, C, H, W = x_nchw.shape
    xf = x_nchw.reshape(B, C, H * W).astype(jnp.float32)               # (B, C, HW)
    score = jnp.einsum("bcs,c->bs", xf, p["ws"][0]) + p["bs"]          # (B, HW)
    score = jax.nn.softmax(score, axis=-1)
    ctx = jnp.einsum("bcs,bs->bc", xf, score)                          # (B, C)
    t1 = ctx @ p["w1"] + p["b1"]                                       # (B, D)
    mu = jnp.mean(t1, axis=-1, keepdims=True)
    var = jnp.mean(jnp.square(t1 - mu), axis=-1, keepdims=True)
    t1 = (t1 - mu) / jnp.sqrt(var + 1e-5) * p["gamma"] + p["beta"]
    t1 = jnp.maximum(t1, 0.0)
    t2 = t1 @ p["w2t"].T + p["b2"][:, 0]                               # (B, C)
    return x_nchw + t2[:, :, None, None].astype(x_nchw.dtype)


if __name__ == "__main__":
    B, C, H, W = 2, 4, 16, 16
    D = 32

    key = jax.random.PRNGKey(0)
    k = jax.random.split(key, 10)
    x = jax.random.normal(k[0], (B, C, H, W), dtype=jnp.float32)

    # Deterministic synthetic parameters (layouts chosen for the kernel):
    params = {
        # score_conv: Conv2d(C, 1, 1x1) -> weight stored as (1, C); bias scalar
        # (bias only used by the reference: softmax makes it a mathematical no-op).
        "ws": 0.1 * jax.random.normal(k[1], (1, C), jnp.float32),
        "bs": 0.1 * jax.random.normal(k[2], (), jnp.float32),
        # conv_1: Conv2d(C, D, 1x1) -> weight stored transposed as (C, D)
        "w1": 0.1 * jax.random.normal(k[3], (C, D), jnp.float32),
        "b1": 0.1 * jax.random.normal(k[4], (1, D), jnp.float32),
        # LayerNorm(D)
        "gamma": 1.0 + 0.1 * jax.random.normal(k[5], (1, D), jnp.float32),
        "beta": 0.1 * jax.random.normal(k[6], (1, D), jnp.float32),
        # conv_2: Conv2d(D, C, 1x1) -> weight kept in PyTorch layout (C, D)
        "w2t": 0.1 * jax.random.normal(k[7], (C, D), jnp.float32),
        "b2": 0.1 * jax.random.normal(k[8], (C, 1), jnp.float32),
    }

    out = jax.block_until_ready(global_context_block(x, params))
    ref = reference_gcb(x, params)

    # Tolerance covers MXU default-precision f32 matmuls (softmax is exact now).
    np.testing.assert_allclose(np.asarray(out), np.asarray(ref),
                               rtol=2e-3, atol=2e-3)

    print("KERNEL_OK")
</pallas_src>

<mosaic_0001>
module attributes {stable_mosaic.version = 11 : i64} {
  func.func @_gcb_kernel(%arg0: i32, %arg1: memref<8x256xf32, #tpu.memory_space<vmem>>, %arg2: memref<2x2x8xf32, #tpu.memory_space<vmem>>, %arg3: memref<2x8x32xf32, #tpu.memory_space<vmem>>, %arg4: memref<3x1x32xf32, #tpu.memory_space<vmem>>, %arg5: memref<8x2xf32, #tpu.memory_space<vmem>>, %arg6: memref<8x1xf32, #tpu.memory_space<vmem>>, %arg7: memref<8x256xf32, #tpu.memory_space<vmem>>) attributes {dimension_semantics = [#tpu.dimension_semantics<parallel>], iteration_bounds = array<i64: 1>, scalar_prefetch = 0 : i64, scratch_operands = 0 : i64, tpu.core_type = #tpu.core_type<tc>, window_params = [{transform_indices = @transform_0, window_bounds = array<i64: 8, 256>}, {pipeline_mode = #tpu.pipeline_mode<synchronous>, transform_indices = @transform_1, window_bounds = array<i64: 2, 2, 8>}, {pipeline_mode = #tpu.pipeline_mode<synchronous>, transform_indices = @transform_2, window_bounds = array<i64: 2, 8, 32>}, {pipeline_mode = #tpu.pipeline_mode<synchronous>, transform_indices = @transform_3, window_bounds = array<i64: 3, 1, 32>}, {pipeline_mode = #tpu.pipeline_mode<synchronous>, transform_indices = @transform_4, window_bounds = array<i64: 8, 2>}, {pipeline_mode = #tpu.pipeline_mode<synchronous>, transform_indices = @transform_5, window_bounds = array<i64: 8, 1>}, {transform_indices = @transform_6, window_bounds = array<i64: 8, 256>}]} {
    %c0 = arith.constant 0 : index
    %c0_0 = arith.constant 0 : index
    %0 = vector.load %arg1[%c0, %c0_0] : memref<8x256xf32, #tpu.memory_space<vmem>>, vector<8x256xf32>
    %c0_1 = arith.constant 0 : index
    %c0_2 = arith.constant 0 : index
    %c0_3 = arith.constant 0 : index
    %1 = vector.load %arg2[%c0_1, %c0_2, %c0_3] : memref<2x2x8xf32, #tpu.memory_space<vmem>>, vector<1x2x8xf32>
    %2 = vector.shape_cast %1 : vector<1x2x8xf32> to vector<2x8xf32>
    %c1 = arith.constant 1 : index
    %c0_4 = arith.constant 0 : index
    %c0_5 = arith.constant 0 : index
    %3 = vector.load %arg2[%c1, %c0_4, %c0_5] : memref<2x2x8xf32, #tpu.memory_space<vmem>>, vector<1x2x8xf32>
    %4 = vector.shape_cast %3 : vector<1x2x8xf32> to vector<2x8xf32>
    %c0_6 = arith.constant 0 : index
    %c0_7 = arith.constant 0 : index
    %c0_8 = arith.constant 0 : index
    %5 = vector.load %arg3[%c0_6, %c0_7, %c0_8] : memref<2x8x32xf32, #tpu.memory_space<vmem>>, vector<1x8x32xf32>
    %6 = vector.shape_cast %5 : vector<1x8x32xf32> to vector<8x32xf32>
    %c1_9 = arith.constant 1 : index
    %c0_10 = arith.constant 0 : index
    %c0_11 = arith.constant 0 : index
    %7 = vector.load %arg3[%c1_9, %c0_10, %c0_11] : memref<2x8x32xf32, #tpu.memory_space<vmem>>, vector<1x8x32xf32>
    %8 = vector.shape_cast %7 : vector<1x8x32xf32> to vector<8x32xf32>
    %c0_12 = arith.constant 0 : index
    %c0_13 = arith.constant 0 : index
    %c0_14 = arith.constant 0 : index
    %9 = vector.load %arg4[%c0_12, %c0_13, %c0_14] : memref<3x1x32xf32, #tpu.memory_space<vmem>>, vector<1x1x32xf32>
    %10 = vector.shape_cast %9 : vector<1x1x32xf32> to vector<1x32xf32>
    %c1_15 = arith.constant 1 : index
    %c0_16 = arith.constant 0 : index
    %c0_17 = arith.constant 0 : index
    %11 = vector.load %arg4[%c1_15, %c0_16, %c0_17] : memref<3x1x32xf32, #tpu.memory_space<vmem>>, vector<1x1x32xf32>
    %12 = vector.shape_cast %11 : vector<1x1x32xf32> to vector<1x32xf32>
    %c2 = arith.constant 2 : index
    %c0_18 = arith.constant 0 : index
    %c0_19 = arith.constant 0 : index
    %13 = vector.load %arg4[%c2, %c0_18, %c0_19] : memref<3x1x32xf32, #tpu.memory_space<vmem>>, vector<1x1x32xf32>
    %14 = vector.shape_cast %13 : vector<1x1x32xf32> to vector<1x32xf32>
    %c0_20 = arith.constant 0 : index
    %c0_21 = arith.constant 0 : index
    %15 = vector.load %arg5[%c0_20, %c0_21] : memref<8x2xf32, #tpu.memory_space<vmem>>, vector<8x2xf32>
    %c0_22 = arith.constant 0 : index
    %c0_23 = arith.constant 0 : index
    %16 = vector.load %arg6[%c0_22, %c0_23] : memref<8x1xf32, #tpu.memory_space<vmem>>, vector<8x1xf32>
    %cst = arith.constant dense<0.000000e+00> : vector<2x256xf32>
    %17 = tpu.matmul %2, %0, %cst {dimension_numbers = #tpu.dot_dimension_numbers<[1], [0], [0], [1], [0, 0, 1, 1], [], []>} : vector<2x8xf32>, vector<8x256xf32>, vector<2x256xf32> -> vector<2x256xf32>
    %cst_24 = arith.constant dense<0xFF800000> : vector<2xf32>
    %18 = vector.multi_reduction <maximumf>, %17, %cst_24 [1] : vector<2x256xf32> to vector<2xf32>
    %19 = vector.shape_cast %18 : vector<2xf32> to vector<2x1xf32>
    %20 = vector.broadcast %19 : vector<2x1xf32> to vector<2x256xf32>
    %21 = arith.subf %17, %20 : vector<2x256xf32>
    %22 = math.exp %21 : vector<2x256xf32>
    %cst_25 = arith.constant dense<0.000000e+00> : vector<2xf32>
    %23 = vector.multi_reduction <add>, %22, %cst_25 [1] : vector<2x256xf32> to vector<2xf32>
    %24 = vector.shape_cast %23 : vector<2xf32> to vector<2x1xf32>
    %25 = vector.broadcast %24 : vector<2x1xf32> to vector<2x256xf32>
    %26 = arith.divf %22, %25 : vector<2x256xf32>
    %cst_26 = arith.constant dense<0.000000e+00> : vector<2x8xf32>
    %27 = tpu.matmul %26, %0, %cst_26 {dimension_numbers = #tpu.dot_dimension_numbers<[1], [1], [0], [0], [0, 0, 1, 0], [], []>} : vector<2x256xf32>, vector<8x256xf32>, vector<2x8xf32> -> vector<2x8xf32>
    %28 = arith.mulf %27, %4 : vector<2x8xf32>
    %cst_27 = arith.constant dense<0.000000e+00> : vector<2x32xf32>
    %29 = tpu.matmul %28, %6, %cst_27 {dimension_numbers = #tpu.dot_dimension_numbers<[1], [0], [0], [1], [0, 0, 1, 1], [], []>} : vector<2x8xf32>, vector<8x32xf32>, vector<2x32xf32> -> vector<2x32xf32>
    %30 = vector.broadcast %10 : vector<1x32xf32> to vector<2x32xf32>
    %31 = arith.addf %29, %30 : vector<2x32xf32>
    %cst_28 = arith.constant dense<0.000000e+00> : vector<2xf32>
    %32 = vector.multi_reduction <add>, %31, %cst_28 [1] : vector<2x32xf32> to vector<2xf32>
    %33 = vector.shape_cast %32 : vector<2xf32> to vector<2x1xf32>
    %cst_29 = arith.constant 3.200000e+01 : f32
    %34 = vector.broadcast %cst_29 : f32 to vector<2x1xf32>
    %35 = arith.divf %33, %34 : vector<2x1xf32>
    %36 = vector.broadcast %35 : vector<2x1xf32> to vector<2x32xf32>
    %37 = arith.subf %31, %36 : vector<2x32xf32>
    %38 = arith.mulf %37, %37 : vector<2x32xf32>
    %cst_30 = arith.constant dense<0.000000e+00> : vector<2xf32>
    %39 = vector.multi_reduction <add>, %38, %cst_30 [1] : vector<2x32xf32> to vector<2xf32>
    %40 = vector.shape_cast %39 : vector<2xf32> to vector<2x1xf32>
    %cst_31 = arith.constant 3.200000e+01 : f32
    %41 = vector.broadcast %cst_31 : f32 to vector<2x1xf32>
    %42 = arith.divf %40, %41 : vector<2x1xf32>
    %43 = vector.broadcast %35 : vector<2x1xf32> to vector<2x32xf32>
    %44 = arith.subf %31, %43 : vector<2x32xf32>
    %cst_32 = arith.constant 9.99999974E-6 : f32
    %45 = vector.broadcast %cst_32 : f32 to vector<2x1xf32>
    %46 = arith.addf %42, %45 : vector<2x1xf32>
    %47 = math.rsqrt %46 : vector<2x1xf32>
    %48 = vector.broadcast %47 : vector<2x1xf32> to vector<2x32xf32>
    %49 = arith.mulf %44, %48 : vector<2x32xf32>
    %50 = vector.broadcast %12 : vector<1x32xf32> to vector<2x32xf32>
    %51 = arith.mulf %49, %50 : vector<2x32xf32>
    %52 = vector.broadcast %14 : vector<1x32xf32> to vector<2x32xf32>
    %53 = arith.addf %51, %52 : vector<2x32xf32>
    %cst_33 = arith.constant 0.000000e+00 : f32
    %54 = vector.broadcast %cst_33 : f32 to vector<2x32xf32>
    %55 = arith.maximumf %53, %54 : vector<2x32xf32>
    %cst_34 = arith.constant dense<0.000000e+00> : vector<8x32xf32>
    %56 = tpu.matmul %15, %55, %cst_34 {dimension_numbers = #tpu.dot_dimension_numbers<[1], [0], [0], [1], [0, 0, 1, 1], [], []>} : vector<8x2xf32>, vector<2x32xf32>, vector<8x32xf32> -> vector<8x32xf32>
    %57 = arith.mulf %56, %8 : vector<8x32xf32>
    %cst_35 = arith.constant dense<0.000000e+00> : vector<8xf32>
    %58 = vector.multi_reduction <add>, %57, %cst_35 [1] : vector<8x32xf32> to vector<8xf32>
    %59 = vector.shape_cast %58 : vector<8xf32> to vector<8x1xf32>
    %60 = arith.addf %59, %16 : vector<8x1xf32>
    %61 = vector.broadcast %60 : vector<8x1xf32> to vector<8x256xf32>
    %62 = arith.addf %0, %61 : vector<8x256xf32>
    %c0_36 = arith.constant 0 : index
    %c0_37 = arith.constant 0 : index
    %63 = vector.load %arg7[%c0_36, %c0_37] : memref<8x256xf32, #tpu.memory_space<vmem>>, vector<8x256xf32>
    tpu.vector_store %arg7[%c0_36, %c0_37], %62 {strides = array<i32>} : memref<8x256xf32, #tpu.memory_space<vmem>>, vector<8x256xf32>,
    return
  }
  func.func @transform_0(%arg0: i32) -> (i32, i32) {
    %c0_i32 = arith.constant 0 : i32
    %c0_i32_0 = arith.constant 0 : i32
    return %arg0, %c0_i32 : i32, i32
  }
  func.func @transform_1(%arg0: i32) -> (i32, i32, i32) {
    %c0_i32 = arith.constant 0 : i32
    %c0_i32_0 = arith.constant 0 : i32
    %c0_i32_1 = arith.constant 0 : i32
    %c0_i32_2 = arith.constant 0 : i32
    return %c0_i32, %c0_i32_0, %c0_i32_1 : i32, i32, i32
  }
  func.func @transform_2(%arg0: i32) -> (i32, i32, i32) {
    %c0_i32 = arith.constant 0 : i32
    %c0_i32_0 = arith.constant 0 : i32
    %c0_i32_1 = arith.constant 0 : i32
    %c0_i32_2 = arith.constant 0 : i32
    return %c0_i32, %c0_i32_0, %c0_i32_1 : i32, i32, i32
  }
  func.func @transform_3(%arg0: i32) -> (i32, i32, i32) {
    %c0_i32 = arith.constant 0 : i32
    %c0_i32_0 = arith.constant 0 : i32
    %c0_i32_1 = arith.constant 0 : i32
    %c0_i32_2 = arith.constant 0 : i32
    return %c0_i32, %c0_i32_0, %c0_i32_1 : i32, i32, i32
  }
  func.func @transform_4(%arg0: i32) -> (i32, i32) {
    %c0_i32 = arith.constant 0 : i32
    %c0_i32_0 = arith.constant 0 : i32
    %c0_i32_1 = arith.constant 0 : i32
    return %c0_i32, %c0_i32_0 : i32, i32
  }
  func.func @transform_5(%arg0: i32) -> (i32, i32) {
    %c0_i32 = arith.constant 0 : i32
    %c0_i32_0 = arith.constant 0 : i32
    %c0_i32_1 = arith.constant 0 : i32
    return %c0_i32, %c0_i32_0 : i32, i32
  }
  func.func @transform_6(%arg0: i32) -> (i32, i32) {
    %c0_i32 = arith.constant 0 : i32
    %c0_i32_0 = arith.constant 0 : i32
    return %arg0, %c0_i32 : i32, i32
  }
}

</mosaic_0001>

<bundles_post_ra>
// kernel: tpu_custom_call.1
= control target key start
LH: loop header
LB: loop body
LE: loop exit
PB: predicated region body
PF: predicated region fallthrough
CT: control target
= control target key end

     0   :  { %11 = vsyncpa [#allocation3], 0  ;;  %s634_s0 = inlined_call_operand.vmem [shape: f32[8,256], index: 0, kind: input, shape index: {}]   ;;  %s635_s1 = inlined_call_operand.vmem [shape: f32[2,2,8], index: 1, kind: input, shape index: {}]   ;;  %s636_s2 = inlined_call_operand.hbm [shape: f32[2,8,32], index: 2, kind: input, shape index: {}]   ;;  %s637_s3 = inlined_call_operand.vmem [shape: f32[3,1,32], index: 3, kind: input, shape index: {}]   ;;  %s638_s4 = inlined_call_operand.vmem [shape: f32[8,2], index: 4, kind: input, shape index: {}]   ;;  %s639_s5 = inlined_call_operand.vmem [shape: f32[8,1], index: 5, kind: input, shape index: {}]   ;;  %s640_s6 = inlined_call_operand.hbm [shape: f32[8,256], index: 6, kind: output, shape index: {}]  }
   0x1   :  { %12 = vsyncpa [#allocation4], 0  ;;  %s524_s21 = smov [#allocation2]   ;;  %s476_s25 = scalar_lea.hbm %s636_s2, 256 }
   0x2   :  { %s22_s22 = sshll.u32 %s524_s21, 4  ;;  %p477_p0 = scmp.ne.s32.totalorder %s636_s2, %s476_s25  ;;  %s23_s22 = int_to_ptr.vmem [resolvable:$true] %s22_s22 }
   0x3   :  { %p480_p1 = scmp.lt.u32.totalorder %s476_s25, %s636_s2 }
   0x5   :  { %p482_p2 = pnand %p480_p1, %p477_p0 }
   0x7   :  { %485 = shalt.err (!%p482_p2)
}
   0x8   :  { %s486_s30 = scalar_lea.vmem %s23_s22, 256  ;;  %p491_p4 = scmp.lt.s32.totalorder %s23_s22, %s23_s22 }
   0x9   :  { %p487_p3 = scmp.ne.s32.totalorder %s23_s22, %s486_s30  ;;  %p492_p5 = scmp.lt.s32.totalorder %s486_s30, %s486_s30 }
   0xb   :  { %p493_p6 = por %p492_p5, %p491_p4 }
   0xd   :  { %p494_p7 = pnand %p493_p6, %p487_p3 }
   0xf   :  { %497 = shalt.err (!%p494_p7)
}
  0x10   :  { %s525_s7 = smov 128   ;;  %s526_s8 = smov 8  }
  0x11   :  { %28 = dma.hbm_to_vmem [thread:$0]  %s636_s2, 256, %s23_s22, [#allocation3], %s525_s7, %s525_s7, %s526_s8  }
  0x12   :  { %520 = dma.done.wait [#allocation3], 256  }
  0x13   :  { %521 = vsyncadd [#allocation3], 4294967040  ;;  %v527_v0 = vmov 0.0   ;;  %v581_v1 = vld [vmem:[%s634_s0 + $0x8] sm:$0xff]  ;;  %v586_v2 = vld [vmem:[%s634_s0] sm:$0xff]  ;;  %vm53_vm0 = vcmask 64512  }
  0x14   :  { %121 = vmatprep.mubr.f32.mxu0 %v527_v0  ;;  %v40_v3 = vld [vmem:[%s635_s1] sm:$0x3]  ;;  %57 = vmatprep.subr.mxu0 %v581_v1  ;;  %vm128_vm1 = vcmask 1041408   ;;  %vm528_vm2 = vmmov 0   ;;  %v435_v24 = vld [vmem:[%s635_s1 + $0x2] sm:$0x3] }
  0x15   :  { %148 = vmatprep.subr.mxu1 %v581_v1  ;;  %58 = vmatpush1.msra.mxu0 %v586_v2  ;;  %v43_v23 = vld [vmem:[#allocation2] sm:$0xff]  ;;  %vm298_vm3 = vcmask 254976   ;;  %vm328_vm4 = vcmask 15360   ;;  %v45_v49 = vld [vmem:[#allocation2 + $0x8] sm:$0xff]  ;;  %vm406_vm5 = vcmask 261120   ;;  %v529_v54 = vmov 0  }
  0x16   :  { %149 = vmatpush1.xpose.msra.mxu1 %v586_v2  ;;  %438 = vmatmul.mubr.msk.f32.vlgmr.msra.gmra.mrb[0].mxu0 %vm53_vm0, %v40_v3  ;;  %v439_v28 = vld [vmem:[%s637_s3] ss:$0 sm:$0xff]  ;;  %v441_v42 = vld [vmem:[%s637_s3 + $0x1] ss:$0 sm:$0xff]  ;;  %v442_v44 = vld [vmem:[%s637_s3 + $0x2] ss:$0 sm:$0xff] }
  0x17   :  { %449 = vmatprep.subr.mxu0 %v527_v0  ;;  %454 = vmatprep.subr.mxu1 %v527_v0  ;;  %v51_v48 = vld [vmem:[%s638_s4] sm:$0xff]  ;;  %s530_s4 = smov [#allocation5]  }
  0x18   :  { %450 = vmatpush3.msra.mxu0 %v43_v23  ;;  %451 = vmatprep.mubr.msk.f32.mxu0 %vm528_vm2, %v527_v0  ;;  %v52_v55 = vld [vmem:[%s639_s5] sm:$0xff]  ;;  %s426_s25 = sshll.u32 %s530_s4, 4  ;;  %s427_s25 = int_to_ptr.vmem [resolvable:$true] %s426_s25 }
  0x19   :  { %466 = vset.pattern.permute.xlu1 %v529_v54  ;;  %467 = vset.pattern.permute.xlu0 %v529_v54  ;;  %s498_s26 = scalar_lea.vmem %s427_s25, 256  ;;  %p503_p9 = scmp.lt.s32.totalorder %s427_s25, %s427_s25 }
  0x1a   :  { %p499_p8 = scmp.ne.s32.totalorder %s427_s25, %s498_s26  ;;  %p504_p10 = scmp.lt.s32.totalorder %s498_s26, %s498_s26 }
  0x1c   :  { %p505_p11 = por %p504_p10, %p503_p9 }
  0x1e   :  { %p506_p12 = pnand %p505_p11, %p499_p8 }
  0xe9   :  { %v123_v4 = vpop.f32.mrb[0].mxu0 }
  0xea   :  { %v125_v5 = vpop.f32.mrb[1].mxu0  ;;  %v129_v6 = vsel %vm128_vm1, %v123_v4, -inf }
  0xeb   :  { %v130_v7 = vsel %vm128_vm1, %v125_v5, -inf }
  0xec   :  { %v131_v8 = vmax.f32 %v129_v6, %v130_v7 }
  0xee   :  { %132 = vmax.xlane.f32.xlu0 %v131_v8 }
 0x17b   :  { %v133_v9 = vpop.xlane.xlu0 %132 }
 0x17c   :  { %v134_v10 = vsub.f32 %v123_v4, %v133_v9  ;;  %v135_v11 = vsub.f32 %v125_v5, %v133_v9 }
 0x17e   :  { %v136_v12 = vmul.f32 1.442695, %v134_v10  ;;  %v138_v13 = vmul.f32 1.442695, %v135_v11 }
 0x180   :  { %468 = vpow2.f32 %v136_v12 }
 0x181   :  { %470 = vpow2.f32 %v138_v13 }
 0x18a   :  { %v469_v14 = vpop.eup %468 }
 0x18b   :  { %v471_v15 = vpop.eup %470  ;;  %v140_v16 = vsel %vm128_vm1, %v469_v14, 0.0 }
 0x18c   :  { %v141_v17 = vsel %vm128_vm1, %v471_v15, 0.0 }
 0x18d   :  { %v142_v18 = vadd.f32 %v141_v17, %v140_v16 }
 0x18f   :  { %143 = vadd.xlane.f32.xlu0 %v142_v18 }
 0x21c   :  { %v144_v19 = vpop.xlane.xlu0 %143 }
 0x21d   :  { %472 = vrcp.f32 %v144_v19 }
 0x227   :  { %v473_v20 = vpop.eup %472 }
 0x228   :  { %v147_v21 = vmul.f32 %v473_v20, %v471_v15  ;;  %v146_v22 = vmul.f32 %v473_v20, %v469_v14 }
 0x22a   :  { %212 = vmatprep.mubr.f32.mxu1 %v147_v21 }
 0x22b   :  { %213 = vmatmul.mubr.f32.vlgmr.msra.gmra.mrb[0].mxu1 %v146_v22 }
 0x22c   :  { %456 = vmatprep.mubr.msk.f32.mxu1 %vm528_vm2, %v527_v0 }
 0x2fe   :  { %v214_v25 = vpop.f32.mrb[0].mxu1 }
 0x2ff   :  { %v218_v26 = vmul.f32 %v435_v24, %v214_v25  ;;  %v216_v27 = vpop.f32.mrb[1].mxu1 }
 0x301   :  { %452 = vmatmul.mubr.msk.f32.vlgmr.msra.gmra.mrb[2].mxu0 %vm53_vm0, %v218_v26 }
 0x3d4   :  { %v294_v29 = vpop.f32.mrb[2].mxu0 }
 0x3d5   :  { %v295_v30 = vadd.f32 %v439_v28, %v294_v29  ;;  %v453_v31 = vpop.f32.mrb[3].mxu0 }
 0x3d7   :  { %v299_v32 = vsel %vm298_vm3, %v295_v30, 0.0 }
 0x3d8   :  { %300 = vadd.xlane.f32.xlu1 %v299_v32 }
 0x465   :  { %v301_v33 = vpop.xlane.xlu1 %300 }
 0x466   :  { %v303_v34 = vmul.f32 0.03125, %v301_v33 }
 0x468   :  { %v304_v35 = vsub.f32 %v295_v30, %v303_v34 }
 0x46a   :  { %v305_v36 = vmul.f32 %v304_v35, %v304_v35 }
 0x46c   :  { %v306_v37 = vsel %vm298_vm3, %v305_v36, 0.0 }
 0x46d   :  { %307 = vadd.xlane.f32.xlu1 %v306_v37 }
 0x4fa   :  { %v308_v38 = vpop.xlane.xlu1 %307 }
 0x4fb   :  { %v309_v39 = vmul.f32 0.03125, %v308_v38 }
 0x4fd   :  { %v310_v40 = vadd.f32 1e-05, %v309_v39 }
 0x4ff   :  { %474 = vrsqrt.f32 %v310_v40 }
 0x509   :  { %v475_v41 = vpop.eup %474 }
 0x50a   :  { %v312_v43 = vmul.f32 %v475_v41, %v304_v35 }
 0x50c   :  { %v319_v45 = vmul.f32 %v441_v42, %v312_v43 }
 0x50e   :  { %v326_v46 = vadd.f32 %v442_v44, %v319_v45 }
 0x510   :  { %v327_v47 = vmax.f32 %v326_v46, 0.0 }
 0x512   :  { %455 = vmatpush3.msk.msra.mxu1 %vm128_vm1, %v327_v47 }
 0x513   :  { %457 = vmatmul.mubr.msk.f32.vlgmr.msra.gmra.mrb[2].mxu1 %vm328_vm4, %v51_v48 }
 0x5e6   :  { %v401_v50 = vpop.f32.mrb[2].mxu1 }
 0x5e7   :  { %v405_v51 = vmul.f32 %v401_v50, %v45_v49  ;;  %v458_v52 = vpop.f32.mrb[3].mxu1 }
 0x5e9   :  { %v407_v53 = vsel %vm406_vm5, %v405_v51, 0.0 }
 0x5ea   :  { %408 = vadd.xlane.f32.xlu0 %v407_v53 }
 0x677   :  { %v409_v56 = vpop.xlane.xlu0 %408 }
 0x678   :  { %v410_v57 = vadd.f32 %v409_v56, %v52_v55 }
 0x67a   :  { %413 = vperm.xlu1 %466, %v410_v57  }
 0x6f9   :  { %v414_v58 = vpop.permute.xlu1 %413 }
 0x6fa   :  { %v416_v59 = vadd.f32 %v414_v58, %v586_v2  ;;  %v417_v60 = vadd.f32 %v414_v58, %v581_v1 }
 0x6fc   :  { %418 = vst [vmem:[#allocation5] sm:$0xff] %v416_v59  ;;  %419 = vst [vmem:[#allocation5 + $0x8] sm:$0xff] %v417_v60 }
 0x6fd   :  { %509 = shalt.err (!%p506_p12)
}
 0x6fe   :  { %s510_s28 = scalar_lea.hbm %s640_s6, 256 }
 0x6ff   :  { %p511_p13 = scmp.ne.s32.totalorder %s640_s6, %s510_s28  ;;  %p514_p0 = scmp.lt.u32.totalorder %s510_s28, %s640_s6 }
 0x701   :  { %p516_p1 = pnand %p514_p0, %p511_p13 }
 0x703   :  { %519 = shalt.err (!%p516_p1)
}
 0x704   :  { %429 = dma.vmem_to_hbm [thread:$0]  %s427_s25, 256, %s640_s6, [#allocation4]  }
 0x705   :  { %522 = dma.done.wait [#allocation4], 256  }
 0x706   :  { %523 = vsyncadd [#allocation4], 4294967040 }
 0x707   :  { %433 = vsyncpa [#allocation3], 1 }
 0x708   :  { %434 = vsyncpa [#allocation4], 1 }

</bundles_post_ra>
